<compile_context>
chip_gen: v5e
topology: v5e:2x2
jax: 0.10.0
libtpu: 0.0.40
codegen_flags: <defaults>
</compile_context>

<pallas_src>
import functools

import jax
import jax.numpy as jnp
from jax.experimental import pallas as pl
from jax.experimental.pallas import tpu as pltpu


def _round_up(x, m):
    return ((x + m - 1) // m) * m


def fcnet_kernel(x_ref, w1_ref, b1_ref, w2_ref, b2_ref, wh_ref, bh_ref, out_ref):
    # shared_fc: Linear -> Tanh -> Linear -> Tanh  (f32 MXU accumulation, f32 tanh)
    x = x_ref[...]
    h1 = jnp.tanh(
        jnp.dot(x, w1_ref[...], preferred_element_type=jnp.float32) + b1_ref[...]
    )
    feat = jnp.tanh(
        jnp.dot(h1, w2_ref[...], preferred_element_type=jnp.float32) + b2_ref[...]
    )
    # Fused actor+critic head: one MXU pass into a 128-lane-dense output slab
    # (columns beyond d_action*2+1 are zero-padded weights/bias).
    out_ref[...] = (
        jnp.dot(feat, wh_ref[...], preferred_element_type=jnp.float32) + bh_ref[...]
    )


@functools.partial(jax.jit, static_argnames=("row_block",))
def my_fcnet_forward(obs, params, *, row_block=512):
    """Returns (action_logits [B, 2*d_action], value [B])."""
    obs = obs.astype(jnp.float32)
    B, d_obs = obs.shape
    hidden = params["w1"].shape[1]
    d_act2 = params["wa"].shape[1]

    # --- fuse actor + critic heads, pad the output side to 128 lanes ----------
    out_w = d_act2 + 1                      # logits columns + 1 value column
    out_pad = _round_up(out_w, 128)         # lane-dense output width
    wh = jnp.zeros((hidden, out_pad), jnp.float32)
    wh = wh.at[:, :d_act2].set(params["wa"]).at[:, d_act2:out_w].set(params["wc"])
    bh = jnp.zeros((1, out_pad), jnp.float32)
    bh = bh.at[:, :d_act2].set(params["ba"]).at[:, d_act2:out_w].set(params["bc"])

    # --- batch tiling: large row blocks, weights resident across the grid -----
    block_rows = min(row_block, _round_up(B, 8))
    B_pad = _round_up(B, block_rows)
    if B_pad != B:
        obs = jnp.pad(obs, ((0, B_pad - B), (0, 0)))
    grid = (B_pad // block_rows,)

    # Per-step VMEM (double-buffered): 2*block_rows*(d_obs+out_pad)*4 B plus the
    # resident weights (~50 KiB) -- well under the 32 MiB limit set below, and
    # far under v7x's 64 MiB physical VMEM.
    const = lambda i: (0, 0)
    out = pl.pallas_call(
        fcnet_kernel,
        out_shape=jax.ShapeDtypeStruct((B_pad, out_pad), jnp.float32),
        grid=grid,
        in_specs=[
            pl.BlockSpec((block_rows, d_obs), lambda i: (i, 0)),   # obs rows
            pl.BlockSpec((d_obs, hidden), const),                  # w1
            pl.BlockSpec((1, hidden), const),                      # b1
            pl.BlockSpec((hidden, hidden), const),                 # w2
            pl.BlockSpec((1, hidden), const),                      # b2
            pl.BlockSpec((hidden, out_pad), const),                # fused head W
            pl.BlockSpec((1, out_pad), const),                     # fused head b
        ],
        out_specs=pl.BlockSpec((block_rows, out_pad), lambda i: (i, 0)),
        compiler_params=pltpu.CompilerParams(
            dimension_semantics=("parallel",),        # shard batch over TCs (v7x)
            vmem_limit_bytes=32 * 1024 * 1024,
        ),
    )(obs, params["w1"], params["b1"], params["w2"], params["b2"], wh, bh)

    # Plain-JAX glue: strip batch/lane padding, split logits vs. value,
    # .squeeze(dim=1) from value_function().
    logits = out[:B, :d_act2]
    value = out[:B, d_act2]
    return logits, value


def init_params(key, d_obs, hidden, d_action):
    ks = jax.random.split(key, 8)
    scale = 0.1

    def w(k, shape):
        return (scale * jax.random.normal(k, shape)).astype(jnp.float32)

    return {
        # shared_fc
        "w1": w(ks[0], (d_obs, hidden)),
        "b1": w(ks[1], (1, hidden)),
        "w2": w(ks[2], (hidden, hidden)),
        "b2": w(ks[3], (1, hidden)),
        # actor: Linear(hidden, d_action * 2)
        "wa": w(ks[4], (hidden, d_action * 2)),
        "ba": w(ks[5], (1, d_action * 2)),
        # critic: Linear(hidden, 1)
        "wc": w(ks[6], (hidden, 1)),
        "bc": w(ks[7], (1, 1)),
    }


def _reference(obs, params):
    feat = jnp.tanh(
        jnp.tanh(obs @ params["w1"] + params["b1"]) @ params["w2"] + params["b2"]
    )
    ref_logits = feat @ params["wa"] + params["ba"]
    ref_value = jnp.squeeze(feat @ params["wc"] + params["bc"], axis=1)
    return ref_logits, ref_value


if __name__ == "__main__":
    B, d_obs, hidden, d_action = 8, 16, 64, 4

    key = jax.random.PRNGKey(0)
    k_obs, k_obs2, k_params = jax.random.split(key, 3)
    obs = jax.random.normal(k_obs, (B, d_obs), dtype=jnp.float32)
    params = init_params(k_params, d_obs, hidden, d_action)

    # Small-batch path (single grid step).
    logits, value = my_fcnet_forward(obs, params)
    jax.block_until_ready((logits, value))
    ref_logits, ref_value = _reference(obs, params)
    assert logits.shape == (B, 2 * d_action)
    assert value.shape == (B,)
    assert jnp.allclose(logits, ref_logits, atol=1e-5), "logits mismatch"
    assert jnp.allclose(value, ref_value, atol=1e-5), "value mismatch"

    # Multi-block path (grid of 3 row blocks + batch padding) to exercise tiling.
    B2 = 600
    obs2 = jax.random.normal(k_obs2, (B2, d_obs), dtype=jnp.float32)
    logits2, value2 = my_fcnet_forward(obs2, params, row_block=256)
    jax.block_until_ready((logits2, value2))
    ref_logits2, ref_value2 = _reference(obs2, params)
    assert logits2.shape == (B2, 2 * d_action)
    assert value2.shape == (B2,)
    assert jnp.allclose(logits2, ref_logits2, atol=1e-5), "tiled logits mismatch"
    assert jnp.allclose(value2, ref_value2, atol=1e-5), "tiled value mismatch"

    print("KERNEL_OK")
</pallas_src>

<mosaic_0001>
module attributes {stable_mosaic.version = 11 : i64} {
  func.func @fcnet_kernel(%arg0: i32, %arg1: memref<8x16xf32, #tpu.memory_space<vmem>>, %arg2: memref<16x64xf32, #tpu.memory_space<vmem>>, %arg3: memref<1x64xf32, #tpu.memory_space<vmem>>, %arg4: memref<64x64xf32, #tpu.memory_space<vmem>>, %arg5: memref<1x64xf32, #tpu.memory_space<vmem>>, %arg6: memref<64x128xf32, #tpu.memory_space<vmem>>, %arg7: memref<1x128xf32, #tpu.memory_space<vmem>>, %arg8: memref<8x128xf32, #tpu.memory_space<vmem>>) attributes {dimension_semantics = [#tpu.dimension_semantics<parallel>], iteration_bounds = array<i64: 1>, scalar_prefetch = 0 : i64, scratch_operands = 0 : i64, tpu.core_type = #tpu.core_type<tc>, window_params = [{transform_indices = @transform_0, window_bounds = array<i64: 8, 16>}, {pipeline_mode = #tpu.pipeline_mode<synchronous>, transform_indices = @transform_1, window_bounds = array<i64: 16, 64>}, {pipeline_mode = #tpu.pipeline_mode<synchronous>, transform_indices = @transform_2, window_bounds = array<i64: 1, 64>}, {pipeline_mode = #tpu.pipeline_mode<synchronous>, transform_indices = @transform_3, window_bounds = array<i64: 64, 64>}, {pipeline_mode = #tpu.pipeline_mode<synchronous>, transform_indices = @transform_4, window_bounds = array<i64: 1, 64>}, {pipeline_mode = #tpu.pipeline_mode<synchronous>, transform_indices = @transform_5, window_bounds = array<i64: 64, 128>}, {pipeline_mode = #tpu.pipeline_mode<synchronous>, transform_indices = @transform_6, window_bounds = array<i64: 1, 128>}, {transform_indices = @transform_7, window_bounds = array<i64: 8, 128>}]} {
    %c0 = arith.constant 0 : index
    %c0_0 = arith.constant 0 : index
    %0 = vector.load %arg1[%c0, %c0_0] : memref<8x16xf32, #tpu.memory_space<vmem>>, vector<8x16xf32>
    %c0_1 = arith.constant 0 : index
    %c0_2 = arith.constant 0 : index
    %1 = vector.load %arg2[%c0_1, %c0_2] : memref<16x64xf32, #tpu.memory_space<vmem>>, vector<16x64xf32>
    %cst = arith.constant dense<0.000000e+00> : vector<8x64xf32>
    %2 = tpu.matmul %0, %1, %cst {dimension_numbers = #tpu.dot_dimension_numbers<[1], [0], [0], [1], [0, 0, 1, 1], [], []>} : vector<8x16xf32>, vector<16x64xf32>, vector<8x64xf32> -> vector<8x64xf32>
    %c0_3 = arith.constant 0 : index
    %c0_4 = arith.constant 0 : index
    %3 = vector.load %arg3[%c0_3, %c0_4] : memref<1x64xf32, #tpu.memory_space<vmem>>, vector<1x64xf32>
    %4 = vector.broadcast %3 : vector<1x64xf32> to vector<8x64xf32>
    %5 = arith.addf %2, %4 : vector<8x64xf32>
    %6 = math.tanh %5 : vector<8x64xf32>
    %c0_5 = arith.constant 0 : index
    %c0_6 = arith.constant 0 : index
    %7 = vector.load %arg4[%c0_5, %c0_6] : memref<64x64xf32, #tpu.memory_space<vmem>>, vector<64x64xf32>
    %cst_7 = arith.constant dense<0.000000e+00> : vector<8x64xf32>
    %8 = tpu.matmul %6, %7, %cst_7 {dimension_numbers = #tpu.dot_dimension_numbers<[1], [0], [0], [1], [0, 0, 1, 1], [], []>} : vector<8x64xf32>, vector<64x64xf32>, vector<8x64xf32> -> vector<8x64xf32>
    %c0_8 = arith.constant 0 : index
    %c0_9 = arith.constant 0 : index
    %9 = vector.load %arg5[%c0_8, %c0_9] : memref<1x64xf32, #tpu.memory_space<vmem>>, vector<1x64xf32>
    %10 = vector.broadcast %9 : vector<1x64xf32> to vector<8x64xf32>
    %11 = arith.addf %8, %10 : vector<8x64xf32>
    %12 = math.tanh %11 : vector<8x64xf32>
    %c0_10 = arith.constant 0 : index
    %c0_11 = arith.constant 0 : index
    %13 = vector.load %arg6[%c0_10, %c0_11] : memref<64x128xf32, #tpu.memory_space<vmem>>, vector<64x128xf32>
    %cst_12 = arith.constant dense<0.000000e+00> : vector<8x128xf32>
    %14 = tpu.matmul %12, %13, %cst_12 {dimension_numbers = #tpu.dot_dimension_numbers<[1], [0], [0], [1], [0, 0, 1, 1], [], []>} : vector<8x64xf32>, vector<64x128xf32>, vector<8x128xf32> -> vector<8x128xf32>
    %c0_13 = arith.constant 0 : index
    %c0_14 = arith.constant 0 : index
    %15 = vector.load %arg7[%c0_13, %c0_14] : memref<1x128xf32, #tpu.memory_space<vmem>>, vector<1x128xf32>
    %16 = vector.broadcast %15 : vector<1x128xf32> to vector<8x128xf32>
    %17 = arith.addf %14, %16 : vector<8x128xf32>
    %c0_15 = arith.constant 0 : index
    %c0_16 = arith.constant 0 : index
    %18 = vector.load %arg8[%c0_15, %c0_16] : memref<8x128xf32, #tpu.memory_space<vmem>>, vector<8x128xf32>
    tpu.vector_store %arg8[%c0_15, %c0_16], %17 {strides = array<i32>} : memref<8x128xf32, #tpu.memory_space<vmem>>, vector<8x128xf32>,
    return
  }
  func.func @transform_0(%arg0: i32) -> (i32, i32) {
    %c0_i32 = arith.constant 0 : i32
    %c0_i32_0 = arith.constant 0 : i32
    return %arg0, %c0_i32 : i32, i32
  }
  func.func @transform_1(%arg0: i32) -> (i32, i32) {
    %c0_i32 = arith.constant 0 : i32
    %c0_i32_0 = arith.constant 0 : i32
    %c0_i32_1 = arith.constant 0 : i32
    return %c0_i32, %c0_i32_0 : i32, i32
  }
  func.func @transform_2(%arg0: i32) -> (i32, i32) {
    %c0_i32 = arith.constant 0 : i32
    %c0_i32_0 = arith.constant 0 : i32
    %c0_i32_1 = arith.constant 0 : i32
    return %c0_i32, %c0_i32_0 : i32, i32
  }
  func.func @transform_3(%arg0: i32) -> (i32, i32) {
    %c0_i32 = arith.constant 0 : i32
    %c0_i32_0 = arith.constant 0 : i32
    %c0_i32_1 = arith.constant 0 : i32
    return %c0_i32, %c0_i32_0 : i32, i32
  }
  func.func @transform_4(%arg0: i32) -> (i32, i32) {
    %c0_i32 = arith.constant 0 : i32
    %c0_i32_0 = arith.constant 0 : i32
    %c0_i32_1 = arith.constant 0 : i32
    return %c0_i32, %c0_i32_0 : i32, i32
  }
  func.func @transform_5(%arg0: i32) -> (i32, i32) {
    %c0_i32 = arith.constant 0 : i32
    %c0_i32_0 = arith.constant 0 : i32
    %c0_i32_1 = arith.constant 0 : i32
    return %c0_i32, %c0_i32_0 : i32, i32
  }
  func.func @transform_6(%arg0: i32) -> (i32, i32) {
    %c0_i32 = arith.constant 0 : i32
    %c0_i32_0 = arith.constant 0 : i32
    %c0_i32_1 = arith.constant 0 : i32
    return %c0_i32, %c0_i32_0 : i32, i32
  }
  func.func @transform_7(%arg0: i32) -> (i32, i32) {
    %c0_i32 = arith.constant 0 : i32
    %c0_i32_0 = arith.constant 0 : i32
    return %arg0, %c0_i32 : i32, i32
  }
}

</mosaic_0001>

<bundles_post_ra>
// kernel: my_fcnet_forward.1
= control target key start
LH: loop header
LB: loop body
LE: loop exit
PB: predicated region body
PF: predicated region fallthrough
CT: control target
= control target key end

     0   :  { %vm33_vm0 = vcmask 130048   ;;  %vm70_vm1 = vcmask 523264   ;;  %s256_s1 = inlined_call_operand.vmem [shape: f32[16,64], index: 1, kind: input, shape index: {}]   ;;  %s257_s0 = inlined_call_operand.vmem [shape: f32[8,16], index: 0, kind: input, shape index: {}]   ;;  %s258_s3 = inlined_call_operand.vmem [shape: f32[64,64], index: 3, kind: input, shape index: {}]   ;;  %s259_s2 = inlined_call_operand.vmem [shape: f32[1,64], index: 2, kind: input, shape index: {}]   ;;  %s260_s4 = inlined_call_operand.vmem [shape: f32[1,64], index: 4, kind: input, shape index: {}]   ;;  %s261_s5 = inlined_call_operand.vmem [shape: f32[64,128], index: 5, kind: input, shape index: {}]   ;;  %s262_s6 = inlined_call_operand.vmem [shape: f32[1,128], index: 6, kind: input, shape index: {}]   ;;  %s263_s7 = inlined_call_operand.vmem [shape: f32[8,128], index: 7, kind: output, shape index: {}]  }
   0x1   :  { %v28_v0 = vld [vmem:[%s256_s1 + $0x8] sm:$0xff]  ;;  %v27_v1 = vld [vmem:[%s256_s1] sm:$0xff]  ;;  %v65_v3 = vld [vmem:[%s258_s3 + $0x38] sm:$0xff] }
   0x2   :  { %51 = vmatpush.msra.mxu0 %v28_v0  ;;  %v26_v2 = vld [vmem:[%s257_s0] sm:$0xff]  ;;  %v64_v4 = vld [vmem:[%s258_s3 + $0x30] sm:$0xff]  ;;  %82 = vmatpush.msra.mxu1 %v65_v3  ;;  %v63_v5 = vld [vmem:[%s258_s3 + $0x28] sm:$0xff] }
   0x3   :  { %v62_v6 = vld [vmem:[%s258_s3 + $0x20] sm:$0xff]  ;;  %v61_v7 = vld [vmem:[%s258_s3 + $0x18] sm:$0xff]  ;;  %v60_v8 = vld [vmem:[%s258_s3 + $0x10] sm:$0xff] }
   0x4   :  { %52 = vmatpush.msra.mxu0 %v27_v1  ;;  %83 = vmatpush.msra.mxu1 %v64_v4  ;;  %v59_v9 = vld [vmem:[%s258_s3 + $0x8] sm:$0xff]  ;;  %v58_v10 = vld [vmem:[%s258_s3] sm:$0xff]  ;;  %v102_v11 = vld [vmem:[%s261_s5 + $0x38] sm:$0xff] }
   0x5   :  { %135 = vmatmul.msk.f32.vlgmr.msra.gmra.mxu0 %vm33_vm0, %v26_v2  ;;  %v101_v12 = vld [vmem:[%s261_s5 + $0x30] sm:$0xff]  ;;  %118 = vmatpush.msra.mxu2 %v102_v11  ;;  %v100_v13 = vld [vmem:[%s261_s5 + $0x28] sm:$0xff]  ;;  %v138_v14 = vld [vmem:[%s259_s2] ss:$0 sm:$0xff] }
   0x6   :  { %84 = vmatpush.msra.mxu1 %v63_v5  ;;  %v99_v18 = vld [vmem:[%s261_s5 + $0x20] sm:$0xff]  ;;  %v98_v19 = vld [vmem:[%s261_s5 + $0x18] sm:$0xff]  ;;  %v97_v20 = vld [vmem:[%s261_s5 + $0x10] sm:$0xff] }
   0x7   :  { %119 = vmatpush.msra.mxu2 %v101_v12  ;;  %v96_v21 = vld [vmem:[%s261_s5 + $0x8] sm:$0xff]  ;;  %v95_v22 = vld [vmem:[%s261_s5] sm:$0xff] }
   0x8   :  { %85 = vmatpush.msra.mxu1 %v62_v6  ;;  %v139_v23 = vld [vmem:[%s260_s4] ss:$0 sm:$0xff] }
   0x9   :  { %120 = vmatpush.msra.mxu2 %v100_v13  ;;  %v140_v27 = vld [vmem:[%s262_s6] ss:$0 sm:$0xff] }
   0xa   :  { %86 = vmatpush.msra.mxu1 %v61_v7 }
   0xb   :  { %121 = vmatpush.msra.mxu2 %v99_v18 }
   0xc   :  { %87 = vmatpush.msra.mxu1 %v60_v8 }
   0xd   :  { %122 = vmatpush.msra.mxu2 %v98_v19 }
   0xe   :  { %88 = vmatpush.msra.mxu1 %v59_v9 }
   0xf   :  { %123 = vmatpush.msra.mxu2 %v97_v20 }
  0x10   :  { %89 = vmatpush.msra.mxu1 %v58_v10 }
  0x11   :  { %124 = vmatpush.msra.mxu2 %v96_v21 }
  0x13   :  { %125 = vmatpush.msra.mxu2 %v95_v22 }
  0x82   :  { %v54_v15 = vpop.f32.mrf.mxu0 }
  0x83   :  { %v55_v16 = vadd.f32 %v138_v14, %v54_v15 }
  0x85   :  { %141 = vtanh.f32 %v55_v16 }
  0x8b   :  { %v142_v17 = vpop.eup %141 }
  0x8c   :  { %136 = vmatmul.msk.f32.vlgmr.msra.gmra.mxu1 %vm70_vm1, %v142_v17 }
 0x109   :  { %v91_v24 = vpop.f32.mrf.mxu1 }
 0x10a   :  { %v92_v25 = vadd.f32 %v139_v23, %v91_v24 }
 0x10c   :  { %143 = vtanh.f32 %v92_v25 }
 0x112   :  { %v144_v26 = vpop.eup %143 }
 0x113   :  { %137 = vmatmul.msk.f32.vlgmr.msra.gmra.mxu2 %vm70_vm1, %v144_v26 }
 0x196   :  { %v127_v28 = vpop.f32.mrf.mxu2 }
 0x197   :  { %v128_v29 = vadd.f32 %v140_v27, %v127_v28 }
 0x199   :  { %130 = vst [vmem:[%s263_s7] sm:$0xff] %v128_v29 }

</bundles_post_ra>
